<compile_context>
chip_gen: v5e
topology: v5e:2x2
jax: 0.10.0
libtpu: 0.0.40
codegen_flags: <defaults>
</compile_context>

<pallas_src>
import jax
import jax.numpy as jnp
import numpy as np
from jax.experimental import pallas as pl
from jax.experimental.pallas import tpu as pltpu

_PREC = jax.lax.Precision.HIGHEST          # exact-f32 MXU matmuls (multi-pass)

_VMEM_BUDGET_BYTES = 40 * 1024 * 1024      # per-step footprint target (fits v7x)
_LANE_FOLD_CAP = 512                       # max folded lane width (bounds T_wf)


# ----------------------------------------------------------------------------
# Gaussian / Toeplitz construction (host side, NumPy)
# ----------------------------------------------------------------------------
def _gaussian_taps_1d(cutoff_frequency: int) -> np.ndarray:
    """Normalized 1D Gaussian taps g (sum == 1), k = 4*cutoff + 1, sigma = cutoff.

    outer(g, g) reproduces part1.create_Gaussian_kernel's 2D kernel.
    """
    k = int(cutoff_frequency) * 4 + 1
    sigma = float(cutoff_frequency)
    coords = np.arange(k, dtype=np.float64) - (k // 2)
    g = np.exp(-(coords ** 2) / (2.0 * sigma ** 2))
    return g / g.sum()


def create_gaussian_kernel_2d(cutoff_frequency: int) -> np.ndarray:
    """2D Gaussian kernel, shape (k, k), sum == 1 (matches the PyTorch path)."""
    g = _gaussian_taps_1d(cutoff_frequency)
    k2 = np.outer(g, g)
    return k2 / k2.sum()


def _band_matrix(n: int, g: np.ndarray) -> np.ndarray:
    """Symmetric banded-Toeplitz matrix implementing zero-padded 'same' 1D conv.

    (T @ x)[i] == sum_d g[d] * x[i + d - pad]  with x treated as zero outside
    [0, n); since g is symmetric the same matrix works as a right operand for
    the horizontal pass (y @ T).
    """
    k = g.shape[0]
    pad = k // 2
    T = np.zeros((n, n), dtype=np.float64)
    for r in range(n):
        lo = max(0, r - pad)
        hi = min(n, r + pad + 1)
        for c in range(lo, hi):
            T[r, c] = g[c - r + pad]
    return T


# ----------------------------------------------------------------------------
# Block sizing
# ----------------------------------------------------------------------------
def _vmem_step_bytes(P: int, H: int, W: int) -> int:
    pw = P * W
    block = H * pw
    # 5 streamed blocks (x1, x2, low, high, hyb) double-buffered by the
    # pipeline, ~4 blocks of live intermediates, plus the (double-buffered)
    # Toeplitz operands.
    return 4 * ((10 + 4) * block + 2 * (H * H + pw * pw))


def _choose_planes_per_step(bc: int, H: int, W: int) -> int:
    """Planes folded into one grid step."""
    if W % 128 == 0:
        # Stores are already lane-dense; skip the wrapper fold transpose
        # (it would cost extra HBM passes at real image sizes).
        return 1
    best = 1
    for p in range(1, bc + 1):
        if bc % p:
            continue
        if p * W > _LANE_FOLD_CAP:
            continue
        if _vmem_step_bytes(p, H, W) <= _VMEM_BUDGET_BYTES:
            best = p
    return best


# ----------------------------------------------------------------------------
# Kernel
# ----------------------------------------------------------------------------
def _hybrid_kernel(x1_ref, x2_ref, th_ref, twf_ref, low_ref, high_ref, hyb_ref):
    """One grid step: a folded slab of P planes, shape (H, P*W).

    x1_ref, x2_ref : VMEM (1, H, P*W)    folded image planes
    th_ref         : VMEM (H, H)         vertical Toeplitz operand
    twf_ref        : VMEM (P*W, P*W)     block-diagonal horizontal operand
    low_ref        : VMEM (1, H, P*W)    low_pass(image1)
    high_ref       : VMEM (1, H, P*W)    image2 - low_pass(image2)
    hyb_ref        : VMEM (1, H, P*W)    clamp(low + high, 0, 1)
    """
    t_h = th_ref[...]
    t_wf = twf_ref[...]

    def low_pass(x):
        # vertical pass (T_H @ x) then horizontal pass (y @ T_Wfold); both on
        # the MXU, 'same' zero padding is encoded in the band structure.
        y = jnp.dot(t_h, x, precision=_PREC, preferred_element_type=jnp.float32)
        return jnp.dot(y, t_wf, precision=_PREC,
                       preferred_element_type=jnp.float32)

    # image2 path first; store high frequencies as soon as they exist.
    x2 = x2_ref[0]
    high2 = x2 - low_pass(x2)
    high_ref[0] = high2

    # image1 path; store low frequencies, then the clipped hybrid.
    low1 = low_pass(x1_ref[0])
    low_ref[0] = low1
    hyb_ref[0] = jnp.clip(low1 + high2, 0.0, 1.0)


# ----------------------------------------------------------------------------
# Wrapper
# ----------------------------------------------------------------------------
def _fold(x, G, P, H, W):
    """(bc, H, W) -> (G, H, P*W): plane p of step g occupies lanes [p*W,(p+1)*W)."""
    return jnp.transpose(x.reshape(G, P, H, W), (0, 2, 1, 3)).reshape(G, H, P * W)


def _unfold(y, G, P, H, W):
    """(G, H, P*W) -> (G*P, H, W): inverse of _fold."""
    return jnp.transpose(y.reshape(G, H, P, W), (0, 2, 1, 3)).reshape(G * P, H, W)


def hybrid_image_model(image1: jax.Array, image2: jax.Array,
                       cutoff_frequency: int):
    """Pallas equivalent of HybridImageModel.forward.

    Args:
      image1, image2: (b, c, m, n) arrays (NCHW, like PyTorch).
      cutoff_frequency: Python int. (PyTorch takes a tensor and calls .item();
        in JAX it must be static because it determines the kernel size.)

    Returns:
      (low_frequencies, high_frequencies, hybrid_image), each (b, c, m, n) f32.
    """
    b, c, H, W = image1.shape
    cutoff_frequency = int(cutoff_frequency)

    g = _gaussian_taps_1d(cutoff_frequency)            # (k,) float64 taps

    bc = b * c
    P = _choose_planes_per_step(bc, H, W)
    G = bc // P
    PW = P * W

    # Toeplitz operands (constants; DMA'd once since their block index is fixed).
    t_h = jnp.asarray(_band_matrix(H, g), dtype=jnp.float32)            # (H, H)
    t_w = _band_matrix(W, g)
    t_wf = jnp.asarray(np.kron(np.eye(P), t_w), dtype=jnp.float32)      # (PW, PW)

    x1 = _fold(image1.astype(jnp.float32).reshape(bc, H, W), G, P, H, W)
    x2 = _fold(image2.astype(jnp.float32).reshape(bc, H, W), G, P, H, W)

    img_spec = pl.BlockSpec((1, H, PW), lambda i: (i, 0, 0))
    th_spec = pl.BlockSpec((H, H), lambda i: (0, 0))
    twf_spec = pl.BlockSpec((PW, PW), lambda i: (0, 0))

    out_shape = tuple(
        jax.ShapeDtypeStruct((G, H, PW), jnp.float32) for _ in range(3))

    est = _vmem_step_bytes(P, H, W)
    vmem_limit = int(min(max(2 * est, 32 * 1024 * 1024), 60 * 1024 * 1024))

    grid_spec = pltpu.PrefetchScalarGridSpec(
        num_scalar_prefetch=0,
        grid=(G,),
        in_specs=[img_spec, img_spec, th_spec, twf_spec],
        out_specs=[img_spec, img_spec, img_spec],
    )

    low, high, hyb = pl.pallas_call(
        _hybrid_kernel,
        out_shape=out_shape,
        grid_spec=grid_spec,
        compiler_params=pltpu.CompilerParams(
            dimension_semantics=("parallel",),
            vmem_limit_bytes=vmem_limit),
    )(x1, x2, t_h, t_wf)

    def unfold(y):
        return _unfold(y, G, P, H, W).reshape(b, c, H, W)

    return unfold(low), unfold(high), unfold(hyb)


# ----------------------------------------------------------------------------
# Independent reference + self-test
# ----------------------------------------------------------------------------
def _reference_numpy(image1, image2, cutoff_frequency):
    """Independent float64 NumPy reference (dense zero-padded correlation)."""
    x1 = np.asarray(image1, dtype=np.float64)
    x2 = np.asarray(image2, dtype=np.float64)
    K = create_gaussian_kernel_2d(cutoff_frequency)
    k = K.shape[0]
    pad = k // 2

    def low_pass(x):
        _, _, H, W = x.shape
        xp = np.pad(x, ((0, 0), (0, 0), (pad, pad), (pad, pad)))
        out = np.zeros_like(x)
        for u in range(k):
            for v in range(k):
                out += K[u, v] * xp[:, :, u:u + H, v:v + W]
        return out

    low1 = low_pass(x1)
    low2 = low_pass(x2)
    high2 = x2 - low2
    hyb = np.clip(low1 + high2, 0.0, 1.0)
    return low1, high2, hyb


if __name__ == "__main__":
    key = jax.random.PRNGKey(0)
    k1, k2 = jax.random.split(key)
    b, c, m, n = 2, 3, 16, 16          # small NCHW images in [0, 1]
    cutoff_frequency = 2               # -> 9x9 Gaussian (taps k = 9)

    image1 = jax.random.uniform(k1, (b, c, m, n), dtype=jnp.float32)
    image2 = jax.random.uniform(k2, (b, c, m, n), dtype=jnp.float32)

    low, high, hyb = hybrid_image_model(image1, image2, cutoff_frequency)
    jax.block_until_ready((low, high, hyb))

    low_r, high_r, hyb_r = _reference_numpy(image1, image2, cutoff_frequency)
    np.testing.assert_allclose(np.asarray(low), low_r, atol=3e-5, rtol=3e-5)
    np.testing.assert_allclose(np.asarray(high), high_r, atol=3e-5, rtol=3e-5)
    np.testing.assert_allclose(np.asarray(hyb), hyb_r, atol=3e-5, rtol=3e-5)

    print("KERNEL_OK")
</pallas_src>

<mosaic_0001>
module attributes {stable_mosaic.version = 11 : i64} {
  func.func @_hybrid_kernel(%arg0: i32, %arg1: memref<1x16x96xf32, #tpu.memory_space<vmem>>, %arg2: memref<1x16x96xf32, #tpu.memory_space<vmem>>, %arg3: memref<16x16xf32, #tpu.memory_space<vmem>>, %arg4: memref<96x96xf32, #tpu.memory_space<vmem>>, %arg5: memref<1x16x96xf32, #tpu.memory_space<vmem>>, %arg6: memref<1x16x96xf32, #tpu.memory_space<vmem>>, %arg7: memref<1x16x96xf32, #tpu.memory_space<vmem>>) attributes {dimension_semantics = [#tpu.dimension_semantics<parallel>], iteration_bounds = array<i64: 1>, scalar_prefetch = 0 : i64, scratch_operands = 0 : i64, tpu.core_type = #tpu.core_type<tc>, window_params = [{transform_indices = @transform_0, window_bounds = array<i64: 1, 16, 96>}, {transform_indices = @transform_1, window_bounds = array<i64: 1, 16, 96>}, {pipeline_mode = #tpu.pipeline_mode<synchronous>, transform_indices = @transform_2, window_bounds = array<i64: 16, 16>}, {pipeline_mode = #tpu.pipeline_mode<synchronous>, transform_indices = @transform_3, window_bounds = array<i64: 96, 96>}, {transform_indices = @transform_4, window_bounds = array<i64: 1, 16, 96>}, {transform_indices = @transform_5, window_bounds = array<i64: 1, 16, 96>}, {transform_indices = @transform_6, window_bounds = array<i64: 1, 16, 96>}]} {
    %c0 = arith.constant 0 : index
    %c0_0 = arith.constant 0 : index
    %0 = vector.load %arg3[%c0, %c0_0] : memref<16x16xf32, #tpu.memory_space<vmem>>, vector<16x16xf32>
    %c0_1 = arith.constant 0 : index
    %c0_2 = arith.constant 0 : index
    %1 = vector.load %arg4[%c0_1, %c0_2] : memref<96x96xf32, #tpu.memory_space<vmem>>, vector<96x96xf32>
    %c0_3 = arith.constant 0 : index
    %c0_4 = arith.constant 0 : index
    %c0_5 = arith.constant 0 : index
    %2 = vector.load %arg2[%c0_3, %c0_4, %c0_5] : memref<1x16x96xf32, #tpu.memory_space<vmem>>, vector<1x16x96xf32>
    %3 = vector.shape_cast %2 : vector<1x16x96xf32> to vector<16x96xf32>
    %cst = arith.constant dense<0.000000e+00> : vector<16x96xf32>
    %4 = tpu.matmul %0, %3, %cst {dimension_numbers = #tpu.dot_dimension_numbers<[1], [0], [0], [1], [0, 0, 1, 1], [], []>, precision = #tpu.contract_precision<fp32>} : vector<16x16xf32>, vector<16x96xf32>, vector<16x96xf32> -> vector<16x96xf32>
    %cst_6 = arith.constant dense<0.000000e+00> : vector<16x96xf32>
    %5 = tpu.matmul %4, %1, %cst_6 {dimension_numbers = #tpu.dot_dimension_numbers<[1], [0], [0], [1], [0, 0, 1, 1], [], []>, precision = #tpu.contract_precision<fp32>} : vector<16x96xf32>, vector<96x96xf32>, vector<16x96xf32> -> vector<16x96xf32>
    %6 = arith.subf %3, %5 : vector<16x96xf32>
    %c0_7 = arith.constant 0 : index
    %c0_8 = arith.constant 0 : index
    %c0_9 = arith.constant 0 : index
    %7 = vector.load %arg6[%c0_7, %c0_8, %c0_9] : memref<1x16x96xf32, #tpu.memory_space<vmem>>, vector<1x16x96xf32>
    %8 = vector.shape_cast %7 : vector<1x16x96xf32> to vector<16x96xf32>
    %9 = vector.shape_cast %6 : vector<16x96xf32> to vector<1x16x96xf32>
    tpu.vector_store %arg6[%c0_7, %c0_8, %c0_9], %9 {strides = array<i32>} : memref<1x16x96xf32, #tpu.memory_space<vmem>>, vector<1x16x96xf32>,
    %c0_10 = arith.constant 0 : index
    %c0_11 = arith.constant 0 : index
    %c0_12 = arith.constant 0 : index
    %10 = vector.load %arg1[%c0_10, %c0_11, %c0_12] : memref<1x16x96xf32, #tpu.memory_space<vmem>>, vector<1x16x96xf32>
    %11 = vector.shape_cast %10 : vector<1x16x96xf32> to vector<16x96xf32>
    %cst_13 = arith.constant dense<0.000000e+00> : vector<16x96xf32>
    %12 = tpu.matmul %0, %11, %cst_13 {dimension_numbers = #tpu.dot_dimension_numbers<[1], [0], [0], [1], [0, 0, 1, 1], [], []>, precision = #tpu.contract_precision<fp32>} : vector<16x16xf32>, vector<16x96xf32>, vector<16x96xf32> -> vector<16x96xf32>
    %cst_14 = arith.constant dense<0.000000e+00> : vector<16x96xf32>
    %13 = tpu.matmul %12, %1, %cst_14 {dimension_numbers = #tpu.dot_dimension_numbers<[1], [0], [0], [1], [0, 0, 1, 1], [], []>, precision = #tpu.contract_precision<fp32>} : vector<16x96xf32>, vector<96x96xf32>, vector<16x96xf32> -> vector<16x96xf32>
    %c0_15 = arith.constant 0 : index
    %c0_16 = arith.constant 0 : index
    %c0_17 = arith.constant 0 : index
    %14 = vector.load %arg5[%c0_15, %c0_16, %c0_17] : memref<1x16x96xf32, #tpu.memory_space<vmem>>, vector<1x16x96xf32>
    %15 = vector.shape_cast %14 : vector<1x16x96xf32> to vector<16x96xf32>
    %16 = vector.shape_cast %13 : vector<16x96xf32> to vector<1x16x96xf32>
    tpu.vector_store %arg5[%c0_15, %c0_16, %c0_17], %16 {strides = array<i32>} : memref<1x16x96xf32, #tpu.memory_space<vmem>>, vector<1x16x96xf32>,
    %17 = arith.addf %13, %6 : vector<16x96xf32>
    %cst_18 = arith.constant 0.000000e+00 : f32
    %cst_19 = arith.constant 1.000000e+00 : f32
    %18 = vector.broadcast %cst_18 : f32 to vector<16x96xf32>
    %19 = arith.maximumf %18, %17 : vector<16x96xf32>
    %20 = vector.broadcast %cst_19 : f32 to vector<16x96xf32>
    %21 = arith.minimumf %20, %19 : vector<16x96xf32>
    %c0_20 = arith.constant 0 : index
    %c0_21 = arith.constant 0 : index
    %c0_22 = arith.constant 0 : index
    %22 = vector.load %arg7[%c0_20, %c0_21, %c0_22] : memref<1x16x96xf32, #tpu.memory_space<vmem>>, vector<1x16x96xf32>
    %23 = vector.shape_cast %22 : vector<1x16x96xf32> to vector<16x96xf32>
    %24 = vector.shape_cast %21 : vector<16x96xf32> to vector<1x16x96xf32>
    tpu.vector_store %arg7[%c0_20, %c0_21, %c0_22], %24 {strides = array<i32>} : memref<1x16x96xf32, #tpu.memory_space<vmem>>, vector<1x16x96xf32>,
    return
  }
  func.func @transform_0(%arg0: i32) -> (i32, i32, i32) {
    %c0_i32 = arith.constant 0 : i32
    %c0_i32_0 = arith.constant 0 : i32
    %c0_i32_1 = arith.constant 0 : i32
    return %arg0, %c0_i32, %c0_i32_0 : i32, i32, i32
  }
  func.func @transform_1(%arg0: i32) -> (i32, i32, i32) {
    %c0_i32 = arith.constant 0 : i32
    %c0_i32_0 = arith.constant 0 : i32
    %c0_i32_1 = arith.constant 0 : i32
    return %arg0, %c0_i32, %c0_i32_0 : i32, i32, i32
  }
  func.func @transform_2(%arg0: i32) -> (i32, i32) {
    %c0_i32 = arith.constant 0 : i32
    %c0_i32_0 = arith.constant 0 : i32
    %c0_i32_1 = arith.constant 0 : i32
    return %c0_i32, %c0_i32_0 : i32, i32
  }
  func.func @transform_3(%arg0: i32) -> (i32, i32) {
    %c0_i32 = arith.constant 0 : i32
    %c0_i32_0 = arith.constant 0 : i32
    %c0_i32_1 = arith.constant 0 : i32
    return %c0_i32, %c0_i32_0 : i32, i32
  }
  func.func @transform_4(%arg0: i32) -> (i32, i32, i32) {
    %c0_i32 = arith.constant 0 : i32
    %c0_i32_0 = arith.constant 0 : i32
    %c0_i32_1 = arith.constant 0 : i32
    return %arg0, %c0_i32, %c0_i32_0 : i32, i32, i32
  }
  func.func @transform_5(%arg0: i32) -> (i32, i32, i32) {
    %c0_i32 = arith.constant 0 : i32
    %c0_i32_0 = arith.constant 0 : i32
    %c0_i32_1 = arith.constant 0 : i32
    return %arg0, %c0_i32, %c0_i32_0 : i32, i32, i32
  }
  func.func @transform_6(%arg0: i32) -> (i32, i32, i32) {
    %c0_i32 = arith.constant 0 : i32
    %c0_i32_0 = arith.constant 0 : i32
    %c0_i32_1 = arith.constant 0 : i32
    return %arg0, %c0_i32, %c0_i32_0 : i32, i32, i32
  }
}

</mosaic_0001>

<bundles_post_ra>
// kernel: tpu_custom_call.1
= control target key start
LH: loop header
LB: loop body
LE: loop exit
PB: predicated region body
PF: predicated region fallthrough
CT: control target
= control target key end

     0   :  { %12 = vsyncpa [#allocation3], 0  ;;  %s1850_s0 = inlined_call_operand.hbm [shape: f32[1,16,96], index: 0, kind: input, shape index: {}]   ;;  %s1851_s1 = inlined_call_operand.hbm [shape: f32[1,16,96], index: 1, kind: input, shape index: {}]   ;;  %s1852_s2 = inlined_call_operand.hbm [shape: f32[16,16], index: 2, kind: input, shape index: {}]   ;;  %s1853_s3 = inlined_call_operand.hbm [shape: f32[96,96], index: 3, kind: input, shape index: {}]   ;;  %s1854_s4 = inlined_call_operand.hbm [shape: f32[1,16,96], index: 4, kind: output, shape index: {0}]   ;;  %s1855_s5 = inlined_call_operand.hbm [shape: f32[1,16,96], index: 5, kind: output, shape index: {1}]   ;;  %s1856_s6 = inlined_call_operand.hbm [shape: f32[1,16,96], index: 6, kind: output, shape index: {2}]  }
   0x1   :  { %13 = vsyncpa [#allocation6], 0 }
   0x2   :  { %14 = vsyncpa [#allocation9], 0 }
   0x3   :  { %15 = vsyncpa [#allocation4], 0 }
   0x4   :  { %16 = vsyncpa [#allocation12], 0  ;;  %s34_s23 = sshll.u32 %s1851_s1, 4  ;;  %s1400_s24 = smov [#allocation5]   ;;  %s35_s23 = int_to_ptr.hbm [resolvable:$true] %s34_s23 }
   0x5   :  { %s36_s25 = sshll.u32 %s1400_s24, 4  ;;  %s21_s28 = sshll.u32 %s1850_s0, 4  ;;  %s37_s25 = int_to_ptr.vmem [resolvable:$true] %s36_s25  ;;  %s22_s28 = int_to_ptr.hbm [resolvable:$true] %s21_s28 }
   0x6   :  { %s1401_s29 = smov 128   ;;  %s1402_s30 = smov 8  }
   0x7   :  { %42 = dma.hbm_to_vmem [thread:$0]  %s35_s23, 256, %s37_s25, [#allocation6], %s1401_s29, %s1401_s29, %s1402_s30  }
   0x8   :  { %s1403_s7 = smov [#allocation2]   ;;  %s47_s1 = sshll.u32 %s1852_s2, 4  ;;  %s48_s1 = int_to_ptr.hbm [resolvable:$true] %s47_s1 }
   0x9   :  { %s23_s8 = sshll.u32 %s1403_s7, 4  ;;  %s60_s12 = sshll.u32 %s1853_s3, 4  ;;  %s24_s8 = int_to_ptr.vmem [resolvable:$true] %s23_s8  ;;  %s61_s12 = int_to_ptr.hbm [resolvable:$true] %s60_s12 }
   0xa   :  { %29 = dma.hbm_to_vmem [thread:$0]  %s22_s28, 256, %s24_s8, [#allocation3], %s1401_s29, %s1401_s29, %s1402_s30  }
   0xb   :  { %s1404_s13 = smov [#allocation7]   ;;  %s1405_s15 = smov [#allocation8]  }
   0xc   :  { %s49_s14 = sshll.u32 %s1404_s13, 4  ;;  %s62_s2 = sshll.u32 %s1405_s15, 4  ;;  %s50_s14 = int_to_ptr.vmem [resolvable:$true] %s49_s14  ;;  %s63_s2 = int_to_ptr.vmem [resolvable:$true] %s62_s2 }
   0xd   :  { %55 = dma.hbm_to_vmem [thread:$0]  %s48_s1, 256, %s50_s14, [#allocation6], %s1401_s29, %s1401_s29, %s1402_s30  }
   0xe   :  { %68 = dma.hbm_to_vmem [thread:$0]  %s61_s12, 1536, %s63_s2, [#allocation9], %s1401_s29, %s1401_s29, %s1402_s30  }
   0xf   :  { %1390 = dma.done.wait [#allocation3], 256  }
  0x10   :  { %1391 = vsyncadd [#allocation3], 4294967040 }
  0x11   :  { %1392 = dma.done.wait [#allocation6], 512  }
  0x12   :  { %1393 = vsyncadd [#allocation6], 4294966784 }
  0x13   :  { %1394 = dma.done.wait [#allocation9], 1536  }
  0x14   :  { %1395 = vsyncadd [#allocation9], 4294965760  ;;  %vm101_vm0 = vcmask 130048   ;;  %v1468_v0 = vld [vmem:[#allocation5 + $0x8] sm:$0xff]  ;;  %v1470_v1 = vld [vmem:[#allocation5] sm:$0xff]  ;;  %vm298_vm1 = vcmask 785408  }
  0x15   :  { %1878 = vst [vmem:[#allocation19_spill] sm:$0xff] %v1468_v0  ;;  %v85_v2 = vld [vmem:[#allocation7] sm:$0xff]  ;;  %v122_v3 = vand.u32 4294901760, %v1468_v0  ;;  %v124_v4 = vand.u32 4294901760, %v1470_v1  ;;  %v86_v6 = vld [vmem:[#allocation7 + $0x8] sm:$0xff]  ;;  %v96_v19 = vld [vmem:[#allocation8 + $0x48] sm:$0xff] }
  0x16   :  { %1879 = vst [vmem:[#allocation20_spill] sm:$0xff] %v1470_v1  ;;  %v103_v5 = vsel %vm101_vm0, %v85_v2, 0  ;;  %v106_v8 = vsel %vm101_vm0, %v86_v6, 0  ;;  %v98_v17 = vld [vmem:[#allocation8 + $0x58] sm:$0xff]  ;;  %v97_v18 = vld [vmem:[#allocation8 + $0x50] sm:$0xff]  ;;  %v1500_v26 = vand.u32 4294901760, %v96_v19 }
  0x17   :  { %v1474_v7 = vand.u32 4294901760, %v103_v5  ;;  %v158_v9 = vsub.f32 %v1468_v0, %v122_v3  ;;  %123 = vmatpush.msra.mxu0 %v122_v3  ;;  %v164_v10 = vsub.f32 %v1470_v1, %v124_v4  ;;  %224 = vmatpush.msra.mxu3 %v122_v3  ;;  %v1478_v11 = vand.u32 4294901760, %v106_v8  ;;  %v95_v44 = vld [vmem:[#allocation8 + $0x40] sm:$0xff]  ;;  %v94_v46 = vld [vmem:[#allocation8 + $0x38] sm:$0xff]  ;;  %v93_v49 = vld [vmem:[#allocation8 + $0x30] sm:$0xff]  ;;  %s1406_s3 = smov [#allocation11]  }
  0x18   :  { %v1489_v22 = vand.u32 4294901760, %v98_v17  ;;  %v1498_v25 = vand.u32 4294901760, %v97_v18  ;;  %v1512_v32 = vsub.f32 %v96_v19, %v1500_v26  ;;  %v1560_v45 = vand.u32 4294901760, %v95_v44  ;;  %v92_v53 = vld [vmem:[#allocation8 + $0x28] sm:$0xff]  ;;  %v91_v58 = vld [vmem:[#allocation8 + $0x20] sm:$0xff]  ;;  %v90_v2 = vld [vmem:[#allocation8 + $0x18] sm:$0xff] }
  0x19   :  { %v1481_v12 = vsub.f32 %v103_v5, %v1474_v7  ;;  %194 = vmatpush.msra.mxu2 %v158_v9  ;;  %125 = vmatpush.msra.mxu0 %v124_v4  ;;  %v159_v13 = vand.u32 4294901760, %v158_v9  ;;  %v165_v14 = vand.u32 4294901760, %v164_v10  ;;  %v1484_v15 = vsub.f32 %v106_v8, %v1478_v11  ;;  %v88_v19 = vld [vmem:[#allocation8 + $0x8] sm:$0xff]  ;;  %s1174_s16 = sshll.u32 %s1406_s3, 4  ;;  %s1176_s19 = sshll.u32 %s1855_s5, 4  ;;  %s1175_s16 = int_to_ptr.vmem [resolvable:$true] %s1174_s16  ;;  %s1177_s19 = int_to_ptr.hbm [resolvable:$true] %s1176_s19 }
  0x1a   :  { %226 = vmatpush.msra.mxu3 %v124_v4  ;;  %v1503_v29 = vsub.f32 %v98_v17, %v1489_v22  ;;  %v1509_v31 = vsub.f32 %v97_v18, %v1498_v25  ;;  %v1525_v36 = vand.u32 4294901760, %v1512_v32  ;;  %v1563_v47 = vsub.f32 %v95_v44, %v1560_v45  ;;  %s1407_s5 = smov [#allocation10]   ;;  %s1163_s23 = sshll.u32 %s1854_s4, 4  ;;  %s1164_s23 = int_to_ptr.hbm [resolvable:$true] %s1163_s23 }
  0x1b   :  { %1880 = vst [vmem:[#allocation21_spill] sm:$0xff] %v1484_v15  ;;  %v1487_v16 = vand.u32 4294901760, %v1481_v12  ;;  %197 = vmatpush.msra.mxu2 %v164_v10  ;;  %v160_v20 = vsub.f32 %v158_v9, %v159_v13  ;;  %257 = vmatpush.msrb.mxu0 %v159_v13  ;;  %v166_v21 = vsub.f32 %v164_v10, %v165_v14  ;;  %v1496_v24 = vand.u32 4294901760, %v1484_v15  ;;  %v89_v9 = vld [vmem:[#allocation8 + $0x10] sm:$0xff]  ;;  %s1161_s20 = sshll.u32 %s1407_s5, 4  ;;  %s1408_s24 = smov [#allocation13]   ;;  %s1162_s20 = int_to_ptr.vmem [resolvable:$true] %s1161_s20 }
  0x1c   :  { %200 = vmatmul.f32.vlgmr.msra.gmra.mxu2 %v1481_v12  ;;  %v1515_v33 = vand.u32 4294901760, %v1503_v29  ;;  %v1522_v35 = vand.u32 4294901760, %v1509_v31  ;;  %1883 = vst [vmem:[#allocation24_spill] sm:$0xff] %v1525_v36  ;;  %v369_v39 = vsub.f32 %v1512_v32, %v1525_v36  ;;  %v1565_v48 = vand.u32 4294901760, %v94_v46  ;;  %s1187_s25 = sshll.u32 %s1408_s24, 4  ;;  %s1189_s28 = sshll.u32 %s1856_s6, 4  ;;  %s1188_s25 = int_to_ptr.vmem [resolvable:$true] %s1187_s25  ;;  %s1190_s28 = int_to_ptr.hbm [resolvable:$true] %s1189_s28 }
  0x1d   :  { %v129_v23 = vsub.f32 %v1481_v12, %v1487_v16  ;;  %230 = vmatmul.f32.vlgmr.msra.gmra.mxu3 %v1487_v16  ;;  %v161_v27 = vand.u32 4294901760, %v160_v20  ;;  %v167_v28 = vand.u32 4294901760, %v166_v21  ;;  %261 = vmatpush.msrb.mxu0 %v165_v14  ;;  %v137_v34 = vsub.f32 %v1484_v15, %v1496_v24 }
  0x1e   :  { %310 = vmatpush.msrb.mxu2 %v1489_v22  ;;  %1881 = vst [vmem:[#allocation22_spill] sm:$0xff] %v1515_v33  ;;  %v357_v37 = vsub.f32 %v1503_v29, %v1515_v33  ;;  %v363_v38 = vsub.f32 %v1509_v31, %v1522_v35  ;;  %v1546_v43 = vand.u32 4294901760, %v369_v39  ;;  %v1570_v50 = vand.u32 4294901760, %v1563_v47 }
  0x1f   :  { %v1506_v30 = vand.u32 4294901760, %v129_v23  ;;  %162 = vmatpush.msra.mxu1 %v161_v27  ;;  %1882 = vst [vmem:[#allocation23_spill] sm:$0xff] %v1522_v35  ;;  %v1540_v41 = vand.u32 4294901760, %v137_v34  ;;  %v1573_v51 = vsub.f32 %v94_v46, %v1565_v48  ;;  %v1575_v52 = vand.u32 4294901760, %v93_v49  ;;  %v87_v34 = vld [vmem:[#allocation8] sm:$0xff] }
  0x20   :  { %312 = vmatpush.msrb.mxu2 %v1498_v25  ;;  %v1536_v40 = vand.u32 4294901760, %v357_v37  ;;  %v1543_v42 = vand.u32 4294901760, %v363_v38  ;;  %1884 = vst [vmem:[#allocation25_spill] sm:$0xff] %v1570_v50  ;;  %v375_v54 = vsub.f32 %v1563_v47, %v1570_v50  ;;  %v1588_v57 = vand.u32 4294901760, %v92_v53 }
  0x21   :  { %131 = vmatmul.f32.vlgmr.msra.gmra.mxu0 %v1506_v30  ;;  %168 = vmatpush.msra.mxu1 %v167_v28  ;;  %v1583_v55 = vand.u32 4294901760, %v1573_v51  ;;  %v1586_v56 = vsub.f32 %v93_v49, %v1575_v52  ;;  %v1605_v63 = vand.u32 4294901760, %v91_v58  ;;  %v1616_v6 = vand.u32 4294901760, %v90_v2 }
  0x22   :  { %441 = vmatpush.msra.mxu0 %v1503_v29  ;;  %170 = vmatmul.f32.vlgmr.msra.gmra.mxu1 %v1474_v7  ;;  %v1593_v59 = vand.u32 4294901760, %v375_v54  ;;  %v1601_v62 = vsub.f32 %v92_v53, %v1588_v57  ;;  %v1632_v17 = vand.u32 4294901760, %v89_v9  ;;  %v1648_v27 = vand.u32 4294901760, %v88_v19 }
  0x23   :  { %314 = vmatpush.msrb.mxu2 %v1500_v26  ;;  %286 = vmatpush.msrb.mxu1 %v122_v3  ;;  %1885 = vst [vmem:[#allocation26_spill] sm:$0xff] %v1583_v55  ;;  %v381_v60 = vsub.f32 %v1573_v51, %v1583_v55  ;;  %v1598_v61 = vand.u32 4294901760, %v1586_v56  ;;  %v1620_v8 = vsub.f32 %v91_v58, %v1605_v63  ;;  %v1664_v44 = vand.u32 4294901760, %v87_v34 }
  0x24   :  { %444 = vmatpush.msra.mxu0 %v1509_v31  ;;  %205 = vmatmul.f32.gmra.mxu2 %v1484_v15  ;;  %v1614_v5 = vand.u32 4294901760, %v1601_v62  ;;  %v1630_v14 = vsub.f32 %v90_v2, %v1616_v6  ;;  %v1646_v23 = vsub.f32 %v89_v9, %v1632_v17  ;;  %1890 = vst [vmem:[#allocation31_spill] sm:$0xff] %v1648_v27 }
  0x25   :  { %236 = vmatmul.f32.gmra.mxu3 %v1496_v24  ;;  %288 = vmatpush.msrb.mxu1 %v124_v4  ;;  %1886 = vst [vmem:[#allocation27_spill] sm:$0xff] %v1598_v61  ;;  %v1609_v3 = vand.u32 4294901760, %v381_v60  ;;  %v387_v4 = vsub.f32 %v1586_v56, %v1598_v61  ;;  %v1635_v18 = vand.u32 4294901760, %v1620_v8  ;;  %v1662_v39 = vsub.f32 %v88_v19, %v1648_v27 }
  0x26   :  { %359 = vmatpush.msrb.mxu3 %v1536_v40  ;;  %447 = vmatpush.msra.mxu0 %v1512_v32  ;;  %1887 = vst [vmem:[#allocation28_spill] sm:$0xff] %v1614_v5  ;;  %v393_v13 = vsub.f32 %v1601_v62, %v1614_v5  ;;  %v1643_v21 = vand.u32 4294901760, %v1630_v14  ;;  %v1659_v38 = vand.u32 4294901760, %v1646_v23  ;;  %v1679_v58 = vsub.f32 %v87_v34, %v1664_v44 }
  0x27   :  { %491 = vmatpush.msra.mxu1 %v1489_v22  ;;  %316 = vmatpush.msrb.mxu2 %v1560_v45  ;;  %v1625_v10 = vand.u32 4294901760, %v387_v4  ;;  %1888 = vst [vmem:[#allocation29_spill] sm:$0xff] %v1635_v18  ;;  %v399_v28 = vsub.f32 %v1620_v8, %v1635_v18  ;;  %v1676_v54 = vand.u32 4294901760, %v1662_v39 }
  0x28   :  { %365 = vmatpush.msrb.mxu3 %v1543_v42  ;;  %450 = vmatpush.msra.mxu0 %v1563_v47  ;;  %v1640_v20 = vand.u32 4294901760, %v393_v13  ;;  %1889 = vst [vmem:[#allocation30_spill] sm:$0xff] %v1643_v21  ;;  %v405_v37 = vsub.f32 %v1630_v14, %v1643_v21  ;;  %v411_v53 = vsub.f32 %v1646_v23, %v1659_v38  ;;  %v1689_v4 = vand.u32 4294901760, %v1679_v58 }
  0x29   :  { %139 = vmatmul.f32.gmra.mxu0 %v1540_v41  ;;  %493 = vmatpush.msra.mxu1 %v1498_v25  ;;  %1891 = vst [vmem:[#allocation32_spill] sm:$0xff] %v1659_v38  ;;  %v1667_v46 = vand.u32 4294901760, %v399_v28  ;;  %v417_v2 = vsub.f32 %v1662_v39, %v1676_v54 }
  0x2a   :  { %371 = vmatpush.msrb.mxu3 %v1546_v43  ;;  %174 = vmatmul.f32.gmra.mxu1 %v1478_v11  ;;  %1892 = vst [vmem:[#allocation33_spill] sm:$0xff] %v1662_v39  ;;  %v1671_v49 = vand.u32 4294901760, %v405_v37  ;;  %v1684_v60 = vand.u32 4294901760, %v411_v53  ;;  %v423_v13 = vsub.f32 %v1679_v58, %v1689_v4 }
  0x2b   :  { %495 = vmatpush.msra.mxu1 %v1500_v26  ;;  %318 = vmatpush.msrb.mxu2 %v1565_v48  ;;  %1893 = vst [vmem:[#allocation34_spill] sm:$0xff] %v1664_v44  ;;  %v1695_v9 = vand.u32 4294901760, %v417_v2 }
  0x2c   :  { %453 = vmatpush.msra.mxu0 %v1573_v51  ;;  %377 = vmatpush.msrb.mxu3 %v1593_v59  ;;  %1894 = vst [vmem:[#allocation35_spill] sm:$0xff] %v1676_v54  ;;  %v1701_v19 = vand.u32 4294901760, %v423_v13  ;;  %v630_v13 = vld [vmem:[#allocation2 + $0x8] sm:$0xff] }
  0x2d   :  { %497 = vmatpush.msra.mxu1 %v1560_v45  ;;  %320 = vmatpush.msrb.mxu2 %v1575_v52  ;;  %1895 = vst [vmem:[#allocation36_spill] sm:$0xff] %v1679_v58  ;;  %v645_v0 = vand.u32 4294901760, %v630_v13 }
  0x2e   :  { %456 = vmatpush.msra.mxu0 %v1586_v56  ;;  %383 = vmatpush.msrb.mxu3 %v1609_v3  ;;  %1896 = vst [vmem:[#allocation37_spill] sm:$0xff] %v1689_v4 }
  0x2f   :  { %499 = vmatpush.msra.mxu1 %v1565_v48  ;;  %322 = vmatpush.msrb.mxu2 %v1588_v57 }
  0x30   :  { %459 = vmatpush.msra.mxu0 %v1601_v62  ;;  %389 = vmatpush.msrb.mxu3 %v1625_v10 }
  0x31   :  { %263 = vmatmul.f32.vlgmr.msrb.gmra.mxu0 %v1474_v7  ;;  %501 = vmatpush.msra.mxu1 %v1575_v52 }
  0x32   :  { %290 = vmatmul.f32.vlgmr.msrb.gmra.mxu1 %v1474_v7  ;;  %324 = vmatpush.msrb.mxu2 %v1605_v63 }
  0x33   :  { %503 = vmatpush.msra.mxu1 %v1588_v57  ;;  %462 = vmatpush.msra.mxu0 %v1620_v8 }
  0x34   :  { %326 = vmatpush.msrb.mxu2 %v1616_v6  ;;  %395 = vmatpush.msrb.mxu3 %v1640_v20 }
  0x35   :  { %505 = vmatpush.msra.mxu1 %v1605_v63  ;;  %465 = vmatpush.msra.mxu0 %v1630_v14 }
  0x36   :  { %328 = vmatpush.msrb.mxu2 %v1632_v17  ;;  %401 = vmatpush.msrb.mxu3 %v1667_v46 }
  0x37   :  { %507 = vmatpush.msra.mxu1 %v1616_v6  ;;  %468 = vmatpush.msra.mxu0 %v1646_v23 }
  0x38   :  { %330 = vmatpush.msrb.mxu2 %v1648_v27  ;;  %407 = vmatpush.msrb.mxu3 %v1671_v49 }
  0x39   :  { %267 = vmatmul.f32.gmra.mxu0 %v1478_v11  ;;  %509 = vmatpush.msra.mxu1 %v1632_v17 }
  0x3a   :  { %294 = vmatmul.f32.gmra.mxu1 %v1478_v11  ;;  %471 = vmatpush.msra.mxu0 %v1662_v39 }
  0x3b   :  { %511 = vmatpush.msra.mxu1 %v1648_v27  ;;  %332 = vmatpush.msrb.mxu2 %v1664_v44 }
  0x3c   :  { %474 = vmatpush.msra.mxu0 %v1679_v58  ;;  %413 = vmatpush.msrb.mxu3 %v1684_v60 }
  0x3d   :  { %513 = vmatpush.msra.mxu1 %v1664_v44  ;;  %534 = vmatpush.msra.mxu2 %v1515_v33 }
  0x3e   :  { %419 = vmatpush.msrb.mxu3 %v1695_v9  ;;  %646 = vmatpush.msrb.mxu0 %v645_v0 }
  0x3f   :  { %538 = vmatpush.msra.mxu2 %v1522_v35 }
  0x40   :  { %425 = vmatpush.msrb.mxu3 %v1701_v19 }
  0x41   :  { %542 = vmatpush.msra.mxu2 %v1525_v36 }
  0x42   :  { %593 = vmatpush.msra.mxu3 %v1489_v22 }
  0x43   :  { %546 = vmatpush.msra.mxu2 %v1570_v50 }
  0x44   :  { %595 = vmatpush.msra.mxu3 %v1498_v25 }
  0x45   :  { %550 = vmatpush.msra.mxu2 %v1583_v55 }
  0x46   :  { %597 = vmatpush.msra.mxu3 %v1500_v26 }
  0x47   :  { %554 = vmatpush.msra.mxu2 %v1598_v61 }
  0x48   :  { %599 = vmatpush.msra.mxu3 %v1560_v45 }
  0x49   :  { %558 = vmatpush.msra.mxu2 %v1614_v5  ;;  %v629_v5 = vld [vmem:[#allocation2] sm:$0xff] }
  0x4a   :  { %601 = vmatpush.msra.mxu3 %v1565_v48  ;;  %v647_v50 = vand.u32 4294901760, %v629_v5 }
  0x4b   :  { %562 = vmatpush.msra.mxu2 %v1635_v18 }
  0x4c   :  { %603 = vmatpush.msra.mxu3 %v1575_v52  ;;  %648 = vmatpush.msrb.mxu0 %v647_v50 }
  0x4d   :  { %566 = vmatpush.msra.mxu2 %v1643_v21 }
  0x4e   :  { %605 = vmatpush.msra.mxu3 %v1588_v57 }
  0x4f   :  { %570 = vmatpush.msra.mxu2 %v1659_v38 }
  0x50   :  { %607 = vmatpush.msra.mxu3 %v1605_v63 }
  0x51   :  { %574 = vmatpush.msra.mxu2 %v1676_v54  ;;  %v681_v54 = vsub.f32 %v630_v13, %v645_v0 }
  0x52   :  { %609 = vmatpush.msra.mxu3 %v1616_v6 }
  0x53   :  { %578 = vmatpush.msra.mxu2 %v1689_v4  ;;  %v682_v18 = vand.u32 4294901760, %v681_v54 }
  0x54   :  { %611 = vmatpush.msra.mxu3 %v1632_v17 }
  0x55   :  { %v683_v55 = vsub.f32 %v681_v54, %v682_v18 }
  0x56   :  { %613 = vmatpush.msra.mxu3 %v1648_v27 }
  0x58   :  { %615 = vmatpush.msra.mxu3 %v1664_v44 }
  0x9e   :  { %v132_v28 = vpop.f32.mrf.mxu0 }
  0x9f   :  { %v171_v34 = vpop.f32.mrf.mxu1  ;;  %v201_v37 = vpop.f32.mrf.mxu2 }
  0xa0   :  { %v172_v53 = vadd.f32 %v171_v34, %v132_v28  ;;  %v231_v1 = vpop.f32.mrf.mxu3  ;;  %v684_v28 = vand.u32 4294901760, %v683_v55  ;;  %v687_v34 = vsub.f32 %v629_v5, %v647_v50 }
  0xa2   :  { %v202_v21 = vadd.f32 %v201_v37, %v172_v53  ;;  %685 = vmatpush.msrb.mxu1 %v684_v28  ;;  %v688_v37 = vand.u32 4294901760, %v687_v34 }
  0xa4   :  { %v232_v61 = vadd.f32 %v231_v1, %v202_v21  ;;  %v689_v39 = vsub.f32 %v687_v34, %v688_v37 }
  0xa6   :  { %v140_v2 = vpop.f32.mrf.mxu0 }
  0xa7   :  { %v175_v38 = vpop.f32.mrf.mxu1  ;;  %v206_v36 = vpop.f32.mrf.mxu2 }
  0xa8   :  { %v176_v4 = vadd.f32 %v175_v38, %v140_v2  ;;  %v237_v53 = vpop.f32.mrf.mxu3  ;;  %v690_v38 = vand.u32 4294901760, %v689_v39 }
  0xaa   :  { %v207_v58 = vadd.f32 %v206_v36, %v176_v4  ;;  %691 = vmatpush.msrb.mxu1 %v690_v38 }
  0xac   :  { %v238_v21 = vadd.f32 %v237_v53, %v207_v58 }
  0xae   :  { %v264_v35 = vpop.f32.mrf.mxu0 }
  0xaf   :  { %v265_v33 = vadd.f32 %v264_v35, %v232_v61  ;;  %v291_v44 = vpop.f32.mrf.mxu1 }
  0xb1   :  { %v292_v27 = vadd.f32 %v291_v44, %v265_v33 }
  0xb3   :  { %v300_v13 = vsel %vm298_vm1, %v292_v27, 0 }
  0xb4   :  { %v333_v1 = vand.u32 4294901760, %v300_v13 }
  0xb6   :  { %v334_v2 = vsub.f32 %v300_v13, %v333_v1  ;;  %v268_v15 = vpop.f32.mrf.mxu0  ;;  %427 = vmatmul.f32.vlgmr.msrb.gmra.mxu3 %v333_v1 }
  0xb7   :  { %v269_v35 = vadd.f32 %v268_v15, %v238_v21  ;;  %747 = vmatpush.msrb.mxu3 %v645_v0  ;;  %v295_v55 = vpop.f32.mrf.mxu1 }
  0xb8   :  { %477 = vmatmul.f32.vlgmr.msra.gmra.mxu0 %v334_v2  ;;  %v335_v61 = vand.u32 4294901760, %v334_v2 }
  0xb9   :  { %v296_v36 = vadd.f32 %v295_v55, %v269_v35  ;;  %749 = vmatpush.msrb.mxu3 %v647_v50  ;;  %780 = vmatpush.msra.mxu0 %v682_v18 }
  0xba   :  { %517 = vmatmul.f32.vlgmr.msra.gmra.mxu1 %v335_v61  ;;  %v336_v33 = vsub.f32 %v334_v2, %v335_v61 }
  0xbb   :  { %v303_v5 = vsel %vm298_vm1, %v296_v36, 0  ;;  %809 = vmatpush.msra.mxu1 %v645_v0  ;;  %784 = vmatpush.msra.mxu0 %v688_v37  ;;  %v1897_v0 = vld [vmem:[#allocation21_spill] sm:$0xff]  ;;  %v1915_v37 = vld [vmem:[#allocation19_spill] sm:$0xff] }
  0xbc   :  { %v341_v27 = vand.u32 4294901760, %v303_v5  ;;  %v337_v39 = vand.u32 4294901760, %v336_v33 }
  0xbd   :  { %811 = vmatpush.msra.mxu1 %v647_v50 }
  0xbe   :  { %v342_v44 = vsub.f32 %v303_v5, %v341_v27  ;;  %338 = vmatmul.f32.vlgmr.msrb.gmra.mxu2 %v337_v39  ;;  %431 = vmatmul.f32.gmra.mxu3 %v341_v27 }
  0xbf   :  { %717 = vmatpush.msrb.mxu2 %v681_v54 }
  0xc0   :  { %482 = vmatmul.f32.gmra.mxu0 %v342_v44  ;;  %v343_v15 = vand.u32 4294901760, %v342_v44 }
  0xc1   :  { %720 = vmatpush.msrb.mxu2 %v687_v34 }
  0xc2   :  { %523 = vmatmul.f32.gmra.mxu1 %v343_v15  ;;  %v344_v58 = vsub.f32 %v342_v44, %v343_v15 }
  0xc4   :  { %v345_v4 = vand.u32 4294901760, %v344_v58 }
  0xc6   :  { %346 = vmatmul.f32.gmra.mxu2 %v345_v4  ;;  %617 = vmatmul.f32.vlgmr.msra.gmra.mxu3 %v333_v1 }
  0xc7   :  { %881 = vmatpush.msra.mxu3 %v1536_v40  ;;  %v1910_v40 = vld [vmem:[#allocation30_spill] sm:$0xff] }
  0xc8   :  { %654 = vmatmul.f32.vlgmr.msrb.gmra.mxu0 %v1506_v30  ;;  %v1907_v30 = vld [vmem:[#allocation27_spill] sm:$0xff] }
  0xc9   :  { %887 = vmatpush.msra.mxu3 %v1543_v42  ;;  %963 = vmatpush.msrb.mxu0 %v1503_v29  ;;  %v1906_v29 = vld [vmem:[#allocation26_spill] sm:$0xff]  ;;  %v1912_v42 = vld [vmem:[#allocation35_spill] sm:$0xff] }
  0xca   :  { %693 = vmatmul.f32.vlgmr.msrb.gmra.mxu1 %v1474_v7 }
  0xcb   :  { %893 = vmatpush.msra.mxu3 %v1546_v43  ;;  %966 = vmatpush.msrb.mxu0 %v1509_v31  ;;  %v1908_v31 = vld [vmem:[#allocation28_spill] sm:$0xff]  ;;  %v1913_v43 = vld [vmem:[#allocation37_spill] sm:$0xff] }
  0xcc   :  { %1013 = vmatpush.msrb.mxu1 %v1489_v22 }
  0xcd   :  { %899 = vmatpush.msra.mxu3 %v1593_v59  ;;  %969 = vmatpush.msrb.mxu0 %v1512_v32  ;;  %v1909_v32 = vld [vmem:[#allocation29_spill] sm:$0xff] }
  0xce   :  { %580 = vmatmul.f32.vlgmr.msra.gmra.mxu2 %v333_v1  ;;  %621 = vmatmul.f32.gmra.mxu3 %v341_v27 }
  0xcf   :  { %832 = vmatpush.msra.mxu2 %v1489_v22  ;;  %905 = vmatpush.msra.mxu3 %v1609_v3 }
  0xd0   :  { %662 = vmatmul.f32.gmra.mxu0 %v1540_v41  ;;  %1015 = vmatpush.msrb.mxu1 %v1498_v25  ;;  %v1911_v41 = vld [vmem:[#allocation32_spill] sm:$0xff] }
  0xd1   :  { %834 = vmatpush.msra.mxu2 %v1498_v25  ;;  %911 = vmatpush.msra.mxu3 %v1625_v10 }
  0xd2   :  { %697 = vmatmul.f32.gmra.mxu1 %v1478_v11  ;;  %972 = vmatpush.msrb.mxu0 %v1563_v47 }
  0xd3   :  { %836 = vmatpush.msra.mxu2 %v1500_v26  ;;  %917 = vmatpush.msra.mxu3 %v1640_v20 }
  0xd4   :  { %1017 = vmatpush.msrb.mxu1 %v1500_v26  ;;  %975 = vmatpush.msrb.mxu0 %v1573_v51 }
  0xd5   :  { %838 = vmatpush.msra.mxu2 %v1560_v45  ;;  %923 = vmatpush.msra.mxu3 %v1667_v46 }
  0xd6   :  { %584 = vmatmul.f32.gmra.mxu2 %v341_v27  ;;  %753 = vmatmul.f32.vlgmr.msrb.gmra.mxu3 %v1487_v16  ;;  %v1901_v16 = vld [vmem:[#allocation34_spill] sm:$0xff] }
  0xd7   :  { %840 = vmatpush.msra.mxu2 %v1565_v48  ;;  %929 = vmatpush.msra.mxu3 %v1671_v49 }
  0xd8   :  { %786 = vmatmul.f32.vlgmr.msra.gmra.mxu0 %v1474_v7  ;;  %1019 = vmatpush.msrb.mxu1 %v1560_v45 }
  0xd9   :  { %842 = vmatpush.msra.mxu2 %v1575_v52  ;;  %935 = vmatpush.msra.mxu3 %v1684_v60 }
  0xda   :  { %813 = vmatmul.f32.vlgmr.msra.gmra.mxu1 %v1474_v7  ;;  %978 = vmatpush.msrb.mxu0 %v1586_v56  ;;  %v1898_v7 = vld [vmem:[#allocation33_spill] sm:$0xff] }
  0xdb   :  { %1021 = vmatpush.msrb.mxu1 %v1565_v48  ;;  %844 = vmatpush.msra.mxu2 %v1588_v57 }
  0xdc   :  { %941 = vmatpush.msra.mxu3 %v1695_v9  ;;  %981 = vmatpush.msrb.mxu0 %v1601_v62 }
  0xdd   :  { %1023 = vmatpush.msrb.mxu1 %v1575_v52  ;;  %846 = vmatpush.msra.mxu2 %v1605_v63 }
  0xde   :  { %723 = vmatmul.f32.vlgmr.msrb.gmra.mxu2 %v1481_v12  ;;  %759 = vmatmul.f32.gmra.mxu3 %v1496_v24  ;;  %v1899_v12 = vld [vmem:[#allocation31_spill] sm:$0xff] }
  0xdf   :  { %947 = vmatpush.msra.mxu3 %v1701_v19  ;;  %984 = vmatpush.msrb.mxu0 %v1620_v8  ;;  %v1903_v24 = vld [vmem:[#allocation23_spill] sm:$0xff] }
  0xe0   :  { %790 = vmatmul.f32.gmra.mxu0 %v1478_v11  ;;  %1025 = vmatpush.msrb.mxu1 %v1588_v57 }
  0xe1   :  { %1115 = vmatpush.msrb.mxu3 %v1489_v22  ;;  %848 = vmatpush.msra.mxu2 %v1616_v6  ;;  %v1902_v22 = vld [vmem:[#allocation22_spill] sm:$0xff] }
  0xe2   :  { %817 = vmatmul.f32.gmra.mxu1 %v1478_v11  ;;  %987 = vmatpush.msrb.mxu0 %v1630_v14  ;;  %v1900_v11 = vld [vmem:[#allocation36_spill] sm:$0xff] }
  0xe3   :  { %1027 = vmatpush.msrb.mxu1 %v1605_v63  ;;  %1117 = vmatpush.msrb.mxu3 %v1498_v25  ;;  %v1904_v25 = vld [vmem:[#allocation24_spill] sm:$0xff] }
  0xe4   :  { %850 = vmatpush.msra.mxu2 %v1632_v17  ;;  %990 = vmatpush.msrb.mxu0 %v1646_v23  ;;  %v1914_v23 = vld [vmem:[#allocation20_spill] sm:$0xff] }
  0xe5   :  { %1029 = vmatpush.msrb.mxu1 %v1616_v6  ;;  %1119 = vmatpush.msrb.mxu3 %v1500_v26  ;;  %v1905_v26 = vld [vmem:[#allocation25_spill] sm:$0xff] }
  0xe6   :  { %728 = vmatmul.f32.gmra.mxu2 %v1897_v0  ;;  %993 = vmatpush.msrb.mxu0 %v1898_v7 }
  0xe7   :  { %852 = vmatpush.msra.mxu2 %v1899_v12  ;;  %1031 = vmatpush.msrb.mxu1 %v1632_v17 }
  0xe8   :  { %1121 = vmatpush.msrb.mxu3 %v1560_v45  ;;  %996 = vmatpush.msrb.mxu0 %v1900_v11 }
  0xe9   :  { %854 = vmatpush.msra.mxu2 %v1901_v16  ;;  %1033 = vmatpush.msrb.mxu1 %v1899_v12 }
  0xea   :  { %1123 = vmatpush.msrb.mxu3 %v1565_v48 }
  0xeb   :  { %1056 = vmatpush.msrb.mxu2 %v1902_v22  ;;  %1035 = vmatpush.msrb.mxu1 %v1901_v16 }
  0xec   :  { %1125 = vmatpush.msrb.mxu3 %v1575_v52 }
  0xed   :  { %1060 = vmatpush.msrb.mxu2 %v1903_v24 }
  0xee   :  { %1127 = vmatpush.msrb.mxu3 %v1588_v57 }
  0xef   :  { %1064 = vmatpush.msrb.mxu2 %v1904_v25 }
  0xf0   :  { %1129 = vmatpush.msrb.mxu3 %v1605_v63 }
  0xf1   :  { %1068 = vmatpush.msrb.mxu2 %v1905_v26 }
  0xf2   :  { %1131 = vmatpush.msrb.mxu3 %v1616_v6 }
  0xf3   :  { %1072 = vmatpush.msrb.mxu2 %v1906_v29 }
  0xf4   :  { %1133 = vmatpush.msrb.mxu3 %v1632_v17 }
  0xf5   :  { %1076 = vmatpush.msrb.mxu2 %v1907_v30 }
  0xf6   :  { %1135 = vmatpush.msrb.mxu3 %v1899_v12 }
  0xf7   :  { %1080 = vmatpush.msrb.mxu2 %v1908_v31 }
  0xf8   :  { %1137 = vmatpush.msrb.mxu3 %v1901_v16 }
  0xf9   :  { %1084 = vmatpush.msrb.mxu2 %v1909_v32 }
  0xfb   :  { %1088 = vmatpush.msrb.mxu2 %v1910_v40 }
  0xfd   :  { %1092 = vmatpush.msrb.mxu2 %v1911_v41 }
  0xff   :  { %1096 = vmatpush.msrb.mxu2 %v1912_v42 }
 0x101   :  { %1100 = vmatpush.msrb.mxu2 %v1913_v43 }
 0x135   :  { %v478_v47 = vpop.f32.mrf.mxu0 }
 0x137   :  { %v518_v48 = vpop.f32.mrf.mxu1 }
 0x139   :  { %v428_v45 = vpop.f32.mrf.mxu3 }
 0x13d   :  { %v483_v52 = vpop.f32.mrf.mxu0 }
 0x13f   :  { %v524_v57 = vpop.f32.mrf.mxu1 }
 0x141   :  { %v339_v50 = vpop.f32.mrf.mxu2  ;;  %v432_v51 = vpop.f32.mrf.mxu3 }
 0x142   :  { %v429_v56 = vadd.f32 %v428_v45, %v339_v50 }
 0x144   :  { %v479_v62 = vadd.f32 %v478_v47, %v429_v56 }
 0x145   :  { %v655_v3 = vpop.f32.mrf.mxu0 }
 0x146   :  { %v519_v8 = vadd.f32 %v518_v48, %v479_v62 }
 0x147   :  { %v694_v14 = vpop.f32.mrf.mxu1 }
 0x148   :  { %v695_v1 = vadd.f32 %v694_v14, %v655_v3 }
 0x149   :  { %v347_v59 = vpop.f32.mrf.mxu2  ;;  %v618_v63 = vpop.f32.mrf.mxu3 }
 0x14a   :  { %v433_v6 = vadd.f32 %v432_v51, %v347_v59 }
 0x14c   :  { %v484_v18 = vadd.f32 %v483_v52, %v433_v6 }
 0x14d   :  { %v663_v54 = vpop.f32.mrf.mxu0 }
 0x14e   :  { %v525_v60 = vadd.f32 %v524_v57, %v484_v18 }
 0x14f   :  { %v698_v28 = vpop.f32.mrf.mxu1 }
 0x150   :  { %v699_v36 = vadd.f32 %v698_v28, %v663_v54 }
 0x151   :  { %v581_v10 = vpop.f32.mrf.mxu2  ;;  %v622_v49 = vpop.f32.mrf.mxu3 }
 0x152   :  { %v582_v17 = vadd.f32 %v581_v10, %v519_v8 }
 0x154   :  { %v619_v20 = vadd.f32 %v618_v63, %v582_v17 }
 0x155   :  { %v787_v38 = vpop.f32.mrf.mxu0 }
 0x156   :  { %v1815_v46 = vsub.f32 %v1914_v23, %v619_v20 }
 0x157   :  { %v814_v35 = vpop.f32.mrf.mxu1 }
 0x158   :  { %627 = vst.msk [vmem:[#allocation11] sm:$0xff] %vm298_vm1, %v1815_v46 }
 0x159   :  { %v585_v9 = vpop.f32.mrf.mxu2  ;;  %v754_v13 = vpop.f32.mrf.mxu3 }
 0x15a   :  { %v586_v19 = vadd.f32 %v585_v9, %v525_v60 }
 0x15c   :  { %v623_v34 = vadd.f32 %v622_v49, %v586_v19 }
 0x15d   :  { %v791_v58 = vpop.f32.mrf.mxu0 }
 0x15e   :  { %v1820_v53 = vsub.f32 %v1915_v37, %v623_v34 }
 0x15f   :  { %v818_v7 = vpop.f32.mrf.mxu1 }
 0x160   :  { %628 = vst.msk [vmem:[#allocation11 + $0x8] sm:$0xff] %vm298_vm1, %v1820_v53 }
 0x161   :  { %v724_v21 = vpop.f32.mrf.mxu2  ;;  %v760_v27 = vpop.f32.mrf.mxu3  ;;  %1182 = dma.vmem_to_hbm [thread:$0]  %s1175_s16, 256, %s1177_s19, [#allocation12], %s1401_s29, %s1401_s29, %s1402_s30  }
 0x162   :  { %v725_v2 = vadd.f32 %v724_v21, %v695_v1 }
 0x164   :  { %v755_v55 = vadd.f32 %v754_v13, %v725_v2 }
 0x166   :  { %v788_v61 = vadd.f32 %v787_v38, %v755_v55 }
 0x168   :  { %v815_v33 = vadd.f32 %v814_v35, %v788_v61 }
 0x169   :  { %v729_v5 = vpop.f32.mrf.mxu2 }
 0x16a   :  { %v822_v39 = vsel %vm298_vm1, %v815_v33, 0  ;;  %v730_v44 = vadd.f32 %v729_v5, %v699_v36 }
 0x16b   :  { %v855_v15 = vand.u32 4294901760, %v822_v39 }
 0x16c   :  { %v761_v4 = vadd.f32 %v760_v27, %v730_v44 }
 0x16d   :  { %v856_v0 = vsub.f32 %v822_v39, %v855_v15  ;;  %949 = vmatmul.f32.vlgmr.msra.gmra.mxu3 %v855_v15 }
 0x16e   :  { %v792_v12 = vadd.f32 %v791_v58, %v761_v4 }
 0x16f   :  { %999 = vmatmul.f32.vlgmr.msrb.gmra.mxu0 %v856_v0  ;;  %v857_v11 = vand.u32 4294901760, %v856_v0 }
 0x170   :  { %v819_v16 = vadd.f32 %v818_v7, %v792_v12 }
 0x171   :  { %1039 = vmatmul.f32.vlgmr.msrb.gmra.mxu1 %v857_v11  ;;  %v858_v22 = vsub.f32 %v856_v0, %v857_v11 }
 0x172   :  { %v825_v24 = vsel %vm298_vm1, %v819_v16, 0 }
 0x173   :  { %v863_v25 = vand.u32 4294901760, %v825_v24  ;;  %v859_v26 = vand.u32 4294901760, %v858_v22 }
 0x175   :  { %v864_v29 = vsub.f32 %v825_v24, %v863_v25  ;;  %860 = vmatmul.f32.vlgmr.msra.gmra.mxu2 %v859_v26  ;;  %953 = vmatmul.f32.gmra.mxu3 %v863_v25 }
 0x177   :  { %1004 = vmatmul.f32.gmra.mxu0 %v864_v29  ;;  %v865_v30 = vand.u32 4294901760, %v864_v29 }
 0x179   :  { %1045 = vmatmul.f32.gmra.mxu1 %v865_v30  ;;  %v866_v31 = vsub.f32 %v864_v29, %v865_v30 }
 0x17b   :  { %v867_v32 = vand.u32 4294901760, %v866_v31 }
 0x17d   :  { %868 = vmatmul.f32.gmra.mxu2 %v867_v32  ;;  %1139 = vmatmul.f32.vlgmr.msrb.gmra.mxu3 %v855_v15 }
 0x185   :  { %1102 = vmatmul.f32.vlgmr.msrb.gmra.mxu2 %v855_v15  ;;  %1143 = vmatmul.f32.gmra.mxu3 %v863_v25 }
 0x18d   :  { %1106 = vmatmul.f32.gmra.mxu2 %v863_v25 }
 0x1ec   :  { %v1000_v45 = vpop.f32.mrf.mxu0 }
 0x1ee   :  { %v1040_v50 = vpop.f32.mrf.mxu1 }
 0x1f0   :  { %v950_v40 = vpop.f32.mrf.mxu3 }
 0x1f4   :  { %v1005_v62 = vpop.f32.mrf.mxu0 }
 0x1f6   :  { %v1046_v8 = vpop.f32.mrf.mxu1 }
 0x1f8   :  { %v861_v41 = vpop.f32.mrf.mxu2  ;;  %v954_v42 = vpop.f32.mrf.mxu3 }
 0x1f9   :  { %v951_v43 = vadd.f32 %v950_v40, %v861_v41 }
 0x1fb   :  { %v1001_v48 = vadd.f32 %v1000_v45, %v951_v43 }
 0x1fd   :  { %v1041_v52 = vadd.f32 %v1040_v50, %v1001_v48 }
 0x200   :  { %v869_v47 = vpop.f32.mrf.mxu2  ;;  %v1140_v56 = vpop.f32.mrf.mxu3 }
 0x201   :  { %v955_v51 = vadd.f32 %v954_v42, %v869_v47 }
 0x203   :  { %v1006_v63 = vadd.f32 %v1005_v62, %v955_v51 }
 0x205   :  { %v1047_v14 = vadd.f32 %v1046_v8, %v1006_v63 }
 0x208   :  { %v1103_v57 = vpop.f32.mrf.mxu2  ;;  %v1144_v23 = vpop.f32.mrf.mxu3 }
 0x209   :  { %v1104_v59 = vadd.f32 %v1103_v57, %v1041_v52 }
 0x20b   :  { %v1141_v3 = vadd.f32 %v1140_v56, %v1104_v59 }
 0x20d   :  { %v1149_v6 = vadd.f32 %v1141_v3, %v1815_v46  ;;  %1147 = vst.msk [vmem:[#allocation10] sm:$0xff] %vm298_vm1, %v1141_v3 }
 0x20f   :  { %v1151_v10 = vmax.f32 %v1149_v6, 0.0 }
 0x210   :  { %v1107_v17 = vpop.f32.mrf.mxu2 }
 0x211   :  { %v1153_v18 = vmin.f32 %v1151_v10, 1.0  ;;  %v1108_v20 = vadd.f32 %v1107_v17, %v1047_v14 }
 0x213   :  { %1155 = vst.msk [vmem:[#allocation13] sm:$0xff] %vm298_vm1, %v1153_v18  ;;  %v1145_v49 = vadd.f32 %v1144_v23, %v1108_v20 }
 0x215   :  { %v1150_v46 = vadd.f32 %v1145_v49, %v1820_v53  ;;  %1148 = vst.msk [vmem:[#allocation10 + $0x8] sm:$0xff] %vm298_vm1, %v1145_v49 }
 0x216   :  { %1169 = dma.vmem_to_hbm [thread:$0]  %s1162_s20, 256, %s1164_s23, [#allocation4], %s1401_s29, %s1401_s29, %s1402_s30  }
 0x217   :  { %v1152_v54 = vmax.f32 %v1150_v46, 0.0 }
 0x219   :  { %v1154_v60 = vmin.f32 %v1152_v54, 1.0 }
 0x21b   :  { %1156 = vst.msk [vmem:[#allocation13 + $0x8] sm:$0xff] %vm298_vm1, %v1154_v60 }
 0x21c   :  { %1195 = dma.vmem_to_hbm [thread:$0]  %s1188_s25, 256, %s1190_s28, [#allocation12], %s1401_s29, %s1401_s29, %s1402_s30  }
 0x21d   :  { %1396 = dma.done.wait [#allocation4], 256  }
 0x21e   :  { %1397 = vsyncadd [#allocation4], 4294967040 }
 0x21f   :  { %1398 = dma.done.wait [#allocation12], 512  }
 0x220   :  { %1399 = vsyncadd [#allocation12], 4294966784 }
 0x221   :  { %1208 = vsyncpa [#allocation3], 1 }
 0x222   :  { %1209 = vsyncpa [#allocation6], 1 }
 0x223   :  { %1210 = vsyncpa [#allocation9], 1 }
 0x224   :  { %1211 = vsyncpa [#allocation4], 1 }
 0x225   :  { %1212 = vsyncpa [#allocation12], 1 }

</bundles_post_ra>
